<compile_context>
chip_gen: v7x
topology: tpu7x:2x2x1
jax: 0.10.0
libtpu: 0.0.40
codegen_flags: <defaults>
</compile_context>

<pallas_src>
import functools

import jax
import jax.numpy as jnp
from jax import lax
from jax.experimental import pallas as pl
from jax.experimental.pallas import tpu as pltpu


def mead_train_kernel(idx_ref, mask_ref, emb_ref, out_ref, *, use_bf16_matmul):
    A, S, _ = idx_ref.shape          # S = block_b * (N + 1) samples in this tile
    E, D = emb_ref.shape             # padded vocab / embedding dims

    cdtype = jnp.bfloat16 if use_bf16_matmul else jnp.float32

    # --- one-hot counts: counts[s, e] = #{a : idx[a, s] == e} -----------------
    # Accumulate one arity slot at a time against a single (S, E) entity iota:
    # no (A, S, E) one-hot is ever materialized (A is tiny & static -> unrolled).
    ent_iota = lax.broadcasted_iota(jnp.int32, (S, E), 1)
    counts = (idx_ref[0] == ent_iota).astype(cdtype)            # (S, E)
    for a in range(1, A):
        counts = counts + (idx_ref[a] == ent_iota).astype(cdtype)

    # --- gather + sum over arity as ONE MXU matmul for every sample ----------
    # counts are exact small integers (exact in bf16 too); f32 MXU accumulation.
    summed = jnp.dot(counts, emb_ref[...],
                     preferred_element_type=jnp.float32)        # (S, D) f32

    # --- squared L2 norm (sqrt-then-square removed: ||x||^2 == sum(x*x)) -----
    ss = jnp.sum(summed * summed, axis=-1, keepdims=True)       # (S, 1)

    # --- scores: positives tanh(ss), negatives tanh(1/ss); one tanh/log pass -
    pos_mask = mask_ref[...]                                    # (S, 1) f32
    arg = jnp.where(pos_mask > 0.5, ss, 1.0 / ss)
    logs = jnp.log(jnp.tanh(arg))                               # (S, 1)

    # --- partial sum for this batch tile, lane-dense (8,128)-aligned slab ----
    out_ref[...] = jnp.broadcast_to(jnp.sum(logs), out_ref.shape)


def _round_up(x, m):
    return (x + m - 1) // m * m


@functools.partial(jax.jit, static_argnames=("block_b", "use_bf16_matmul"))
def mead_forward(x_pos, x_neg, emb, *, block_b=None, use_bf16_matmul=None):
    B, A = x_pos.shape
    _, N, _ = x_neg.shape
    E, D = emb.shape
    n_samples = N + 1
    S = B * n_samples

    # bf16 MXU operands only when the table is non-trivial; counts are exact
    # small ints either way, but bf16 rounds the embedding values, so stay f32
    # at small/demo scale to match the f32 reference to 1e-5.
    if use_bf16_matmul is None:
        use_bf16_matmul = (E * D) >= (1 << 20)

    # Zero-pad E and D to lane multiples (lane-dense counts & matmul output).
    # Padded rows/cols are zero and never indexed -> results are unchanged.
    E_pad = _round_up(E, 128)
    D_pad = _round_up(D, 128)
    emb_p = jnp.pad(emb, ((0, E_pad - E), (0, D_pad - D)))
    if use_bf16_matmul:
        emb_p = emb_p.astype(jnp.bfloat16)      # cast once, in the wrapper

    # Interleave [pos, neg_0 .. neg_{N-1}] per batch row: row r = b*(N+1)+sample.
    # Arity goes on the leading (untiled) axis -> no in-kernel lane slicing.
    idx_all = jnp.concatenate([x_pos[:, None, :], x_neg], axis=1).astype(jnp.int32)
    idx_t = jnp.transpose(idx_all.reshape(S, A), (1, 0))[:, :, None]    # (A, S, 1)
    # Positive-row mask precomputed here (avoids in-kernel integer mod).
    pos_mask = (jnp.arange(S, dtype=jnp.int32) % n_samples == 0)
    pos_mask = pos_mask.astype(jnp.float32)[:, None]                    # (S, 1)

    if block_b is None:
        # >=2 tiles when the per-tile row count stays sublane aligned: shards the
        # batch across both TensorCores on v7x; negligible cost on 1-TC chips.
        if B % 2 == 0 and ((B // 2) * n_samples) % 8 == 0:
            block_b = B // 2
        else:
            block_b = B
    assert B % block_b == 0
    num_tiles = B // block_b
    s_blk = block_b * n_samples
    assert num_tiles == 1 or s_blk % 8 == 0, "tile row count must be sublane aligned"

    # Explicit VMEM budget: single-buffered table + double-buffered, lane-padded
    # index/mask/output blocks + in-kernel (S,E)/(S,D) intermediates. Clamp to
    # v7x's 64 MiB physical ceiling so tiling stays a deliberate input.
    el = 2 if use_bf16_matmul else 4
    vmem_est = (E_pad * D_pad * el              # table (untiled VMEM, 1 buffer)
                + 2 * A * s_blk * 128 * 4       # idx block (size-1 lane dim pads to 128)
                + 2 * s_blk * 128 * 4           # mask block
                + 2 * 8 * 128 * 4               # output slab
                + s_blk * E_pad * el            # counts
                + s_blk * D_pad * 4)            # matmul output (f32)
    vmem_limit = int(min(max(2 * vmem_est, 32 * 2 ** 20), 64 * 2 ** 20))

    kern = functools.partial(mead_train_kernel, use_bf16_matmul=use_bf16_matmul)

    partial_sums = pl.pallas_call(
        kern,
        out_shape=jax.ShapeDtypeStruct((num_tiles, 8, 128), jnp.float32),
        grid=(num_tiles,),
        in_specs=[
            pl.BlockSpec((A, s_blk, 1), lambda i: (0, i, 0)),    # indices (pipelined)
            pl.BlockSpec((s_blk, 1), lambda i: (i, 0)),          # pos/neg row mask
            pl.BlockSpec(memory_space=pltpu.MemorySpace.VMEM),   # full table, 1 buffer
        ],
        out_specs=pl.BlockSpec((1, 8, 128), lambda i: (i, 0, 0)),
        compiler_params=pltpu.CompilerParams(
            dimension_semantics=("parallel",),                   # v7x: 2 TCs at >=2 tiles
            vmem_limit_bytes=vmem_limit),
    )(idx_t, pos_mask, emb_p)

    # Each tile wrote its partial sum broadcast over an aligned (8, 128) slab.
    return jnp.sum(partial_sums[:, 0, 0]) / B


def mead_forward_ref(x_pos, x_neg, emb):
    # pure-JAX reference (mirrors the PyTorch module literally)
    def calc_score(idx, neg_sample):
        e = emb[idx]                                   # (B, A, D)
        s = jnp.sum(e, axis=1)                         # (B, D)
        sq = jnp.sqrt(jnp.sum(s * s, axis=-1)) ** 2    # (B,)
        sq = sq[..., None]                             # (B, 1)
        if neg_sample:
            sq = 1.0 / sq
        return jnp.tanh(sq)

    scores_p = calc_score(x_pos, False)                                   # (B, 1)
    N = x_neg.shape[1]
    logs_n = [jnp.log(calc_score(x_neg[:, n, :], True)) for n in range(N)]
    scores_n = jnp.sum(jnp.concatenate(logs_n, axis=1), axis=-1, keepdims=True)
    sample_scores = scores_n + jnp.log(scores_p)
    return jnp.mean(jnp.squeeze(sample_scores))


if __name__ == "__main__":
    num_entities = 32   # E
    emb_dim = 32        # D
    B, A, N = 8, 3, 4   # batch, tuple arity, negative samples per positive

    key = jax.random.PRNGKey(0)
    k_emb, k_pos, k_neg = jax.random.split(key, 3)

    # nn.Embedding default init: N(0, 1)
    emb = jax.random.normal(k_emb, (num_entities, emb_dim), dtype=jnp.float32)
    x_pos = jax.random.randint(k_pos, (B, A), 0, num_entities, dtype=jnp.int32)
    x_neg = jax.random.randint(k_neg, (B, N, A), 0, num_entities, dtype=jnp.int32)

    out = mead_forward(x_pos, x_neg, emb)
    out = jax.block_until_ready(out)

    ref = mead_forward_ref(x_pos, x_neg, emb)
    assert jnp.allclose(out, ref, rtol=1e-5, atol=1e-5), (out, ref)

    print("KERNEL_OK")
</pallas_src>

<mosaic_0001>
module attributes {stable_mosaic.version = 11 : i64} {
  func.func @mead_train_kernel(%arg0: i32, %arg1: memref<3x40x1xi32, #tpu.memory_space<vmem>>, %arg2: memref<40x1xf32, #tpu.memory_space<vmem>>, %arg3: memref<128x128xf32, #tpu.memory_space<vmem>>, %arg4: memref<1x8x128xf32, #tpu.memory_space<vmem>>) attributes {dimension_semantics = [#tpu.dimension_semantics<parallel>], iteration_bounds = array<i64: 1>, scalar_prefetch = 0 : i64, scratch_operands = 0 : i64, tpu.core_type = #tpu.core_type<tc>, window_params = [{transform_indices = @transform_0, window_bounds = array<i64: 3, 40, 1>}, {transform_indices = @transform_1, window_bounds = array<i64: 40, 1>}, {pipeline_mode = #tpu.pipeline_mode<synchronous>, transform_indices = @transform_2, window_bounds = array<i64: 128, 128>}, {transform_indices = @transform_3, window_bounds = array<i64: 1, 8, 128>}]} {
    %0 = tpu.iota {dimensions = array<i32: 1>} : vector<40x128xi32>
    %c0 = arith.constant 0 : index
    %c0_0 = arith.constant 0 : index
    %c0_1 = arith.constant 0 : index
    %1 = vector.load %arg1[%c0, %c0_0, %c0_1] : memref<3x40x1xi32, #tpu.memory_space<vmem>>, vector<1x40x1xi32>
    %2 = vector.shape_cast %1 : vector<1x40x1xi32> to vector<40x1xi32>
    %3 = vector.broadcast %2 : vector<40x1xi32> to vector<40x128xi32>
    %4 = arith.cmpi eq, %3, %0 : vector<40x128xi32>
    %5 = arith.extui %4 : vector<40x128xi1> to vector<40x128xi32>
    %6 = arith.sitofp %5 : vector<40x128xi32> to vector<40x128xf32>
    %c1 = arith.constant 1 : index
    %c0_2 = arith.constant 0 : index
    %c0_3 = arith.constant 0 : index
    %7 = vector.load %arg1[%c1, %c0_2, %c0_3] : memref<3x40x1xi32, #tpu.memory_space<vmem>>, vector<1x40x1xi32>
    %8 = vector.shape_cast %7 : vector<1x40x1xi32> to vector<40x1xi32>
    %9 = vector.broadcast %8 : vector<40x1xi32> to vector<40x128xi32>
    %10 = arith.cmpi eq, %9, %0 : vector<40x128xi32>
    %11 = arith.extui %10 : vector<40x128xi1> to vector<40x128xi32>
    %12 = arith.sitofp %11 : vector<40x128xi32> to vector<40x128xf32>
    %13 = arith.addf %6, %12 : vector<40x128xf32>
    %c2 = arith.constant 2 : index
    %c0_4 = arith.constant 0 : index
    %c0_5 = arith.constant 0 : index
    %14 = vector.load %arg1[%c2, %c0_4, %c0_5] : memref<3x40x1xi32, #tpu.memory_space<vmem>>, vector<1x40x1xi32>
    %15 = vector.shape_cast %14 : vector<1x40x1xi32> to vector<40x1xi32>
    %16 = vector.broadcast %15 : vector<40x1xi32> to vector<40x128xi32>
    %17 = arith.cmpi eq, %16, %0 : vector<40x128xi32>
    %18 = arith.extui %17 : vector<40x128xi1> to vector<40x128xi32>
    %19 = arith.sitofp %18 : vector<40x128xi32> to vector<40x128xf32>
    %20 = arith.addf %13, %19 : vector<40x128xf32>
    %c0_6 = arith.constant 0 : index
    %c0_7 = arith.constant 0 : index
    %21 = vector.load %arg3[%c0_6, %c0_7] : memref<128x128xf32, #tpu.memory_space<vmem>>, vector<128x128xf32>
    %cst = arith.constant dense<0.000000e+00> : vector<40x128xf32>
    %22 = tpu.matmul %20, %21, %cst {dimension_numbers = #tpu.dot_dimension_numbers<[1], [0], [0], [1], [0, 0, 1, 1], [], []>} : vector<40x128xf32>, vector<128x128xf32>, vector<40x128xf32> -> vector<40x128xf32>
    %23 = arith.mulf %22, %22 : vector<40x128xf32>
    %cst_8 = arith.constant dense<0.000000e+00> : vector<40xf32>
    %24 = vector.multi_reduction <add>, %23, %cst_8 [1] : vector<40x128xf32> to vector<40xf32>
    %25 = vector.shape_cast %24 : vector<40xf32> to vector<40x1xf32>
    %c0_9 = arith.constant 0 : index
    %c0_10 = arith.constant 0 : index
    %26 = vector.load %arg2[%c0_9, %c0_10] : memref<40x1xf32, #tpu.memory_space<vmem>>, vector<40x1xf32>
    %cst_11 = arith.constant 5.000000e-01 : f32
    %27 = vector.broadcast %cst_11 : f32 to vector<40x1xf32>
    %28 = arith.cmpf ogt, %26, %27 : vector<40x1xf32>
    %cst_12 = arith.constant 1.000000e+00 : f32
    %29 = vector.broadcast %cst_12 : f32 to vector<40x1xf32>
    %30 = arith.divf %29, %25 : vector<40x1xf32>
    %31 = arith.select %28, %25, %30 : vector<40x1xi1>, vector<40x1xf32>
    %32 = math.tanh %31 : vector<40x1xf32>
    %33 = math.log %32 : vector<40x1xf32>
    %34 = vector.shape_cast %33 : vector<40x1xf32> to vector<1x40x1xf32>
    %cst_13 = arith.constant dense<0.000000e+00> : vector<1xf32>
    %35 = vector.multi_reduction <add>, %34, %cst_13 [1, 2] : vector<1x40x1xf32> to vector<1xf32>
    %36 = vector.shape_cast %35 : vector<1xf32> to vector<1x1x1xf32>
    %37 = vector.extract %36[0, 0, 0] : f32 from vector<1x1x1xf32>
    %38 = vector.broadcast %37 : f32 to vector<1x8x128xf32>
    %c0_14 = arith.constant 0 : index
    %c0_15 = arith.constant 0 : index
    %c0_16 = arith.constant 0 : index
    %39 = vector.load %arg4[%c0_14, %c0_15, %c0_16] : memref<1x8x128xf32, #tpu.memory_space<vmem>>, vector<1x8x128xf32>
    tpu.vector_store %arg4[%c0_14, %c0_15, %c0_16], %38 {strides = array<i32>} : memref<1x8x128xf32, #tpu.memory_space<vmem>>, vector<1x8x128xf32>,
    return
  }
  func.func @transform_0(%arg0: i32) -> (i32, i32, i32) {
    %c0_i32 = arith.constant 0 : i32
    %c0_i32_0 = arith.constant 0 : i32
    %c0_i32_1 = arith.constant 0 : i32
    return %c0_i32, %arg0, %c0_i32_0 : i32, i32, i32
  }
  func.func @transform_1(%arg0: i32) -> (i32, i32) {
    %c0_i32 = arith.constant 0 : i32
    %c0_i32_0 = arith.constant 0 : i32
    return %arg0, %c0_i32 : i32, i32
  }
  func.func @transform_2(%arg0: i32) -> (i32, i32) {
    %c0_i32 = arith.constant 0 : i32
    %c0_i32_0 = arith.constant 0 : i32
    %c0_i32_1 = arith.constant 0 : i32
    return %c0_i32, %c0_i32_0 : i32, i32
  }
  func.func @transform_3(%arg0: i32) -> (i32, i32, i32) {
    %c0_i32 = arith.constant 0 : i32
    %c0_i32_0 = arith.constant 0 : i32
    %c0_i32_1 = arith.constant 0 : i32
    return %arg0, %c0_i32, %c0_i32_0 : i32, i32, i32
  }
}

</mosaic_0001>

<bundles_post_ra>
// kernel: mead_forward.1
= control target key start
LH: loop header
LB: loop body
LE: loop exit
PB: predicated region body
PF: predicated region fallthrough
CT: control target
= control target key end

     0   :  { %v490_v0 = vmov 0   ;;  %v491_v5 = vmov 0.0|0.0   ;;  %vm492_vm0 = vmmov 0   ;;  %v493_v18 = vmov 0.0   ;;  %s666_s0 = inlined_call_operand.vmem [shape: s32[3,40,1], index: 0, kind: input, shape index: {}]   ;;  %s667_s2 = inlined_call_operand.vmem [shape: f32[128,128], index: 2, kind: input, shape index: {}]   ;;  %s668_s1 = inlined_call_operand.vmem [shape: f32[40,1], index: 1, kind: input, shape index: {}]   ;;  %s669_s3 = inlined_call_operand.vmem [shape: f32[1,8,128], index: 3, kind: output, shape index: {}]  }
   0x1   :  { %459 = vset.pattern.permute.xlu1 %v490_v0  ;;  %458 = vset.pattern.permute.xlu0 %v490_v0  ;;  %v334_v1 = vld [vmem:[%s666_s0 + $0x50] sm:$0xff]  ;;  %v16_v2 = vld [vmem:[%s666_s0] sm:$0xff]  ;;  %v17_v3 = vld [vmem:[%s666_s0 + $0x8] sm:$0xff]  ;;  %v14_v42 = vlaneseq }
   0x2   :  { %99 = vperm.xlu1 %459, %v334_v1   ;;  %22 = vperm.xlu0 %458, %v16_v2   ;;  %v324_v4 = vld [vmem:[%s666_s0 + $0x28] sm:$0xff]  ;;  %v133_v6 = vld [vmem:[%s667_s2] sm:$0xff]  ;;  %v135_v8 = vld [vmem:[%s667_s2 + $0x10] sm:$0xff] }
   0x3   :  { %412 = vmatprep.subr.bf16.mxu0 %v491_v5  ;;  %436 = vmatprep.subr.bf16.mxu1 %v491_v5  ;;  %v134_v7 = vld [vmem:[%s667_s2 + $0x8] sm:$0xff]  ;;  %v335_v9 = vld [vmem:[%s666_s0 + $0x58] sm:$0xff]  ;;  %v325_v10 = vld [vmem:[%s666_s0 + $0x30] sm:$0xff]  ;;  %v15_v43 = vand.u32 127, %v14_v42 }
   0x4   :  { %v413_v11 = vpack.c.bf16 %v134_v7, %v133_v6  ;;  %v136_v12 = vld [vmem:[%s667_s2 + $0x18] sm:$0xff]  ;;  %v137_v14 = vld [vmem:[%s667_s2 + $0x20] sm:$0xff]  ;;  %v138_v15 = vld [vmem:[%s667_s2 + $0x28] sm:$0xff]  ;;  %397 = vmatprep.mubr.msk.f32.mxu0 %vm492_vm0, %v493_v18  ;;  %406 = vmatprep.mubr.msk.f32.mxu1 %vm492_vm0, %v493_v18 }
   0x5   :  { %v416_v13 = vpack.c.bf16 %v136_v12, %v135_v8  ;;  %v19_v16 = vld [vmem:[%s666_s0 + $0x18] sm:$0xff]  ;;  %v18_v17 = vld [vmem:[%s666_s0 + $0x10] sm:$0xff]  ;;  %v419_v19 = vpack.c.bf16 %v138_v15, %v137_v14  ;;  %v327_v22 = vld [vmem:[%s666_s0 + $0x40] sm:$0xff] }
   0x6   :  { %25 = vperm.xlu1 %459, %v17_v3   ;;  %58 = vperm.xlu0 %458, %v324_v4   ;;  %v139_v20 = vld [vmem:[%s667_s2 + $0x30] sm:$0xff]  ;;  %v140_v21 = vld [vmem:[%s667_s2 + $0x38] sm:$0xff]  ;;  %v141_v25 = vld [vmem:[%s667_s2 + $0x40] sm:$0xff] }
   0x7   :  { %414 = vmatpush3.bf16.msra.mxu0 %v413_v11  ;;  %444 = vmatpush3.bf16.msra.mxu1 %v413_v11  ;;  %v326_v23 = vld [vmem:[%s666_s0 + $0x38] sm:$0xff]  ;;  %v422_v24 = vpack.c.bf16 %v140_v21, %v139_v20  ;;  %v142_v26 = vld [vmem:[%s667_s2 + $0x48] sm:$0xff]  ;;  %v336_v28 = vld [vmem:[%s666_s0 + $0x60] sm:$0xff] }
   0x8   :  { %415 = vmatprep.subr.bf16.mxu0 %v491_v5  ;;  %437 = vmatprep.subr.bf16.mxu1 %v491_v5  ;;  %v337_v27 = vld [vmem:[%s666_s0 + $0x68] sm:$0xff]  ;;  %v425_v29 = vpack.c.bf16 %v142_v26, %v141_v25  ;;  %v143_v30 = vld [vmem:[%s667_s2 + $0x50] sm:$0xff]  ;;  %v144_v31 = vld [vmem:[%s667_s2 + $0x58] sm:$0xff] }
   0x9   :  { %v328_v32 = vld [vmem:[%s666_s0 + $0x48] sm:$0xff]  ;;  %v20_v33 = vld [vmem:[%s666_s0 + $0x20] sm:$0xff]  ;;  %v428_v34 = vpack.c.bf16 %v144_v31, %v143_v30  ;;  %v338_v37 = vld [vmem:[%s666_s0 + $0x70] sm:$0xff] }
   0xa   :  { %102 = vperm.xlu1 %459, %v335_v9   ;;  %61 = vperm.xlu0 %458, %v325_v10   ;;  %v145_v35 = vld [vmem:[%s667_s2 + $0x60] sm:$0xff]  ;;  %v146_v36 = vld [vmem:[%s667_s2 + $0x68] sm:$0xff]  ;;  %v147_v39 = vld [vmem:[%s667_s2 + $0x70] sm:$0xff] }
   0xb   :  { %417 = vmatpush3.bf16.msra.mxu0 %v416_v13  ;;  %445 = vmatpush3.bf16.msra.mxu1 %v416_v13  ;;  %v431_v38 = vpack.c.bf16 %v146_v36, %v145_v35  ;;  %v148_v40 = vld [vmem:[%s667_s2 + $0x78] sm:$0xff] }
   0xc   :  { %418 = vmatprep.subr.bf16.mxu0 %v491_v5  ;;  %438 = vmatprep.subr.bf16.mxu1 %v491_v5  ;;  %v434_v41 = vpack.c.bf16 %v148_v40, %v147_v39 }
   0xe   :  { %31 = vperm.xlu1 %459, %v19_v16   ;;  %28 = vperm.xlu0 %458, %v18_v17  }
   0xf   :  { %420 = vmatpush3.bf16.msra.mxu0 %v419_v19  ;;  %446 = vmatpush3.bf16.msra.mxu1 %v419_v19 }
  0x10   :  { %421 = vmatprep.subr.bf16.mxu0 %v491_v5  ;;  %439 = vmatprep.subr.bf16.mxu1 %v491_v5 }
  0x12   :  { %67 = vperm.xlu1 %459, %v327_v22   ;;  %64 = vperm.xlu0 %458, %v326_v23  }
  0x13   :  { %423 = vmatpush3.bf16.msra.mxu0 %v422_v24  ;;  %447 = vmatpush3.bf16.msra.mxu1 %v422_v24 }
  0x14   :  { %424 = vmatprep.subr.bf16.mxu0 %v491_v5  ;;  %440 = vmatprep.subr.bf16.mxu1 %v491_v5 }
  0x16   :  { %108 = vperm.xlu1 %459, %v337_v27   ;;  %105 = vperm.xlu0 %458, %v336_v28  }
  0x17   :  { %426 = vmatpush3.bf16.msra.mxu0 %v425_v29  ;;  %448 = vmatpush3.bf16.msra.mxu1 %v425_v29 }
  0x18   :  { %427 = vmatprep.subr.bf16.mxu0 %v491_v5  ;;  %441 = vmatprep.subr.bf16.mxu1 %v491_v5 }
  0x1a   :  { %70 = vperm.xlu1 %459, %v328_v32   ;;  %34 = vperm.xlu0 %458, %v20_v33  }
  0x1b   :  { %429 = vmatpush3.bf16.msra.mxu0 %v428_v34  ;;  %449 = vmatpush3.bf16.msra.mxu1 %v428_v34 }
  0x1c   :  { %430 = vmatprep.subr.bf16.mxu0 %v491_v5  ;;  %442 = vmatprep.subr.bf16.mxu1 %v491_v5 }
  0x1e   :  { %111 = vperm.xlu0 %458, %v338_v37   ;;  %v255_v37 = vld [vmem:[%s668_s1 + $0x8] sm:$0xff] }
  0x1f   :  { %432 = vmatpush3.bf16.msra.mxu0 %v431_v38  ;;  %450 = vmatpush3.bf16.msra.mxu1 %v431_v38  ;;  %v254_v38 = vld [vmem:[%s668_s1] sm:$0xff] }
  0x20   :  { %433 = vmatprep.subr.bf16.mxu0 %v491_v5  ;;  %443 = vmatprep.subr.bf16.mxu1 %v491_v5 }
  0x23   :  { %435 = vmatpush3.bf16.msra.mxu0 %v434_v41  ;;  %451 = vmatpush3.bf16.msra.mxu1 %v434_v41 }
  0x81   :  { %v100_v44 = vpop.permute.xlu1 %99  ;;  %v23_v45 = vpop.permute.xlu0 %22 }
  0x82   :  { %vm36_vm1 = vcmp.eq.s32.totalorder %v23_v45, %v15_v43  ;;  %vm113_vm2 = vcmp.eq.s32.totalorder %v100_v44, %v15_v43  ;;  %v257_v45 = vld [vmem:[%s668_s1 + $0x18] sm:$0xff] }
  0x83   :  { %v319_v48 = vsel %vm36_vm1, 1.0, %v493_v18  ;;  %v339_v51 = vsel %vm113_vm2, 1.0, %v493_v18  ;;  %vm259_vm1 = vcmp.gt.f32.partialorder %v254_v38, 0.5  ;;  %vm262_vm2 = vcmp.gt.f32.partialorder %v257_v45, 0.5 }
  0x85   :  { %v26_v46 = vpop.permute.xlu1 %25  ;;  %v59_v47 = vpop.permute.xlu0 %58 }
  0x86   :  { %vm72_vm3 = vcmp.eq.s32.totalorder %v59_v47, %v15_v43  ;;  %vm37_vm4 = vcmp.eq.s32.totalorder %v26_v46, %v15_v43  ;;  %v256_v46 = vld [vmem:[%s668_s1 + $0x10] sm:$0xff] }
  0x87   :  { %v329_v49 = vsel %vm72_vm3, 1.0, %v493_v18  ;;  %v320_v55 = vsel %vm37_vm4, 1.0, %v493_v18  ;;  %vm261_vm3 = vcmp.gt.f32.partialorder %v256_v46, 0.5 }
  0x88   :  { %v87_v50 = vadd.f32 %v329_v49, %v319_v48 }
  0x89   :  { %v103_v52 = vpop.permute.xlu1 %102  ;;  %v62_v53 = vpop.permute.xlu0 %61 }
  0x8a   :  { %vm114_vm5 = vcmp.eq.s32.totalorder %v103_v52, %v15_v43  ;;  %vm73_vm6 = vcmp.eq.s32.totalorder %v62_v53, %v15_v43  ;;  %v128_v54 = vadd.f32 %v339_v51, %v87_v50  ;;  %v258_v52 = vld [vmem:[%s668_s1 + $0x20] sm:$0xff] }
  0x8b   :  { %v330_v56 = vsel %vm73_vm6, 1.0, %v493_v18  ;;  %v340_v58 = vsel %vm114_vm5, 1.0, %v493_v18  ;;  %vm263_vm4 = vcmp.gt.f32.partialorder %v258_v52, 0.5  ;;  %vm294_vm5 = vcmask 7168  }
  0x8c   :  { %v88_v57 = vadd.f32 %v330_v56, %v320_v55  ;;  %398 = vmatmul.mubr.f32.vlgmr.msra.gmra.mrb[0].mxu0 %v128_v54 }
  0x8d   :  { %v32_v59 = vpop.permute.xlu1 %31  ;;  %v29_v60 = vpop.permute.xlu0 %28  ;;  %400 = vmatprep.mubr.msk.f32.mxu0 %vm492_vm0, %v493_v18 }
  0x8e   :  { %v129_v61 = vadd.f32 %v340_v58, %v88_v57  ;;  %vm39_vm7 = vcmp.eq.s32.totalorder %v32_v59, %v15_v43  ;;  %vm38_vm8 = vcmp.eq.s32.totalorder %v29_v60, %v15_v43 }
  0x8f   :  { %v322_v2 = vsel %vm39_vm7, 1.0, %v493_v18  ;;  %v321_v3 = vsel %vm38_vm8, 1.0, %v493_v18 }
  0x90   :  { %401 = vmatmul.mubr.f32.gmra.mrb[2].mxu0 %v129_v61 }
  0x91   :  { %v68_v62 = vpop.permute.xlu1 %67  ;;  %v65_v63 = vpop.permute.xlu0 %64  ;;  %403 = vmatprep.mubr.msk.f32.mxu0 %vm492_vm0, %v493_v18 }
  0x92   :  { %vm75_vm9 = vcmp.eq.s32.totalorder %v68_v62, %v15_v43  ;;  %vm74_vm10 = vcmp.eq.s32.totalorder %v65_v63, %v15_v43 }
  0x93   :  { %v332_v0 = vsel %vm75_vm9, 1.0, %v493_v18  ;;  %v331_v1 = vsel %vm74_vm10, 1.0, %v493_v18 }
  0x94   :  { %v90_v6 = vadd.f32 %v332_v0, %v322_v2  ;;  %v89_v7 = vadd.f32 %v331_v1, %v321_v3 }
  0x95   :  { %v109_v4 = vpop.permute.xlu1 %108  ;;  %v106_v5 = vpop.permute.xlu0 %105 }
  0x96   :  { %vm116_vm11 = vcmp.eq.s32.totalorder %v109_v4, %v15_v43  ;;  %vm115_vm12 = vcmp.eq.s32.totalorder %v106_v5, %v15_v43 }
  0x97   :  { %v342_v8 = vsel %vm116_vm11, 1.0, %v493_v18  ;;  %v341_v9 = vsel %vm115_vm12, 1.0, %v493_v18 }
  0x98   :  { %v131_v10 = vadd.f32 %v342_v8, %v90_v6  ;;  %v130_v11 = vadd.f32 %v341_v9, %v89_v7 }
  0x99   :  { %v71_v12 = vpop.permute.xlu1 %70  ;;  %v35_v13 = vpop.permute.xlu0 %34 }
  0x9a   :  { %vm76_vm13 = vcmp.eq.s32.totalorder %v71_v12, %v15_v43  ;;  %vm40_vm14 = vcmp.eq.s32.totalorder %v35_v13, %v15_v43  ;;  %404 = vmatmul.mubr.f32.gmra.mrb[4].mxu0 %v130_v11  ;;  %407 = vmatmul.mubr.f32.vlgmr.msra.gmra.mrb[0].mxu1 %v131_v10 }
  0x9b   :  { %v333_v14 = vsel %vm76_vm13, 1.0, %v493_v18  ;;  %v323_v15 = vsel %vm40_vm14, 1.0, %v493_v18  ;;  %409 = vmatprep.mubr.msk.f32.mxu1 %vm492_vm0, %v493_v18  ;;  %vm260_vm0 = vcmp.gt.f32.partialorder %v255_v37, 0.5 }
  0x9c   :  { %v91_v17 = vadd.f32 %v333_v14, %v323_v15 }
  0x9d   :  { %v112_v16 = vpop.permute.xlu0 %111 }
  0x9e   :  { %vm117_vm15 = vcmp.eq.s32.totalorder %v112_v16, %v15_v43 }
  0x9f   :  { %v343_v19 = vsel %vm117_vm15, 1.0, %v493_v18 }
  0xa0   :  { %v132_v20 = vadd.f32 %v343_v19, %v91_v17 }
  0xa2   :  { %410 = vmatmul.mubr.f32.gmra.mrb[2].mxu1 %v132_v20 }
 0x15f   :  { %v215_v21 = vpop.f32.mrb[0].mxu0 }
 0x160   :  { %v239_v22 = vmul.f32 %v215_v21, %v215_v21  ;;  %v399_v23 = vpop.f32.mrb[1].mxu0 }
 0x162   :  { %244 = vadd.xlane.f32.xlu1 %v239_v22 }
 0x163   :  { %v220_v24 = vpop.f32.mrb[2].mxu0 }
 0x164   :  { %v240_v25 = vmul.f32 %v220_v24, %v220_v24  ;;  %v402_v26 = vpop.f32.mrb[3].mxu0 }
 0x166   :  { %246 = vadd.xlane.f32.xlu0 %v240_v25 }
 0x16d   :  { %v225_v27 = vpop.f32.mrb[4].mxu0  ;;  %v230_v28 = vpop.f32.mrb[0].mxu1 }
 0x16e   :  { %v241_v29 = vmul.f32 %v225_v27, %v225_v27  ;;  %v242_v30 = vmul.f32 %v230_v28, %v230_v28  ;;  %v405_v31 = vpop.f32.mrb[5].mxu0  ;;  %v408_v32 = vpop.f32.mrb[1].mxu1 }
 0x170   :  { %250 = vadd.xlane.f32.xlu1 %v242_v30  ;;  %248 = vadd.xlane.f32.xlu0 %v241_v29 }
 0x175   :  { %v235_v33 = vpop.f32.mrb[2].mxu1 }
 0x176   :  { %v243_v18 = vmul.f32 %v235_v33, %v235_v33  ;;  %v411_v34 = vpop.f32.mrb[3].mxu1 }
 0x178   :  { %252 = vadd.xlane.f32.xlu0 %v243_v18 }
 0x1ef   :  { %v245_v35 = vpop.xlane.xlu1 %244 }
 0x1f0   :  { %460 = vrcp.f32 %v245_v35 }
 0x1f3   :  { %v247_v36 = vpop.xlane.xlu0 %246 }
 0x1f4   :  { %462 = vrcp.f32 %v247_v36 }
 0x1fa   :  { %v461_v39 = vpop.eup %460 }
 0x1fb   :  { %v274_v44 = vsel %vm259_vm1, %v245_v35, %v461_v39 }
 0x1fd   :  { %v251_v40 = vpop.xlane.xlu1 %250  ;;  %v249_v41 = vpop.xlane.xlu0 %248 }
 0x1fe   :  { %v463_v42 = vpop.eup %462  ;;  %464 = vrcp.f32 %v251_v40 }
 0x1ff   :  { %v275_v43 = vsel %vm260_vm0, %v247_v36, %v463_v42  ;;  %466 = vrcp.f32 %v249_v41 }
 0x200   :  { %468 = vtanh.f32 %v275_v43 }
 0x201   :  { %470 = vtanh.f32 %v274_v44 }
 0x205   :  { %v253_v47 = vpop.xlane.xlu0 %252 }
 0x206   :  { %472 = vrcp.f32 %v253_v47 }
 0x208   :  { %v465_v48 = vpop.eup %464 }
 0x209   :  { %v467_v49 = vpop.eup %466  ;;  %v277_v50 = vsel %vm262_vm2, %v251_v40, %v465_v48 }
 0x20a   :  { %474 = vtanh.f32 %v277_v50  ;;  %v276_v51 = vsel %vm261_vm3, %v249_v41, %v467_v49  ;;  %v469_v53 = vpop.eup %468 }
 0x20b   :  { %476 = vtanh.f32 %v276_v51  ;;  %v471_v54 = vpop.eup %470 }
 0x20c   :  { %478 = vlog2.f32 %v469_v53 }
 0x20d   :  { %480 = vlog2.f32 %v471_v54 }
 0x210   :  { %v473_v55 = vpop.eup %472 }
 0x211   :  { %v278_v56 = vsel %vm263_vm4, %v253_v47, %v473_v55 }
 0x212   :  { %482 = vtanh.f32 %v278_v56 }
 0x214   :  { %v475_v57 = vpop.eup %474 }
 0x215   :  { %v477_v58 = vpop.eup %476  ;;  %484 = vlog2.f32 %v475_v57 }
 0x216   :  { %486 = vlog2.f32 %v477_v58  ;;  %v479_v59 = vpop.eup %478 }
 0x217   :  { %v481_v60 = vpop.eup %480  ;;  %v287_v62 = vmul.f32 0.6931472, %v479_v59 }
 0x218   :  { %v285_v63 = vmul.f32 0.6931472, %v481_v60 }
 0x219   :  { %v296_v1 = vsel %vm294_vm5, %v287_v62, 0.0 }
 0x21a   :  { %v295_v4 = vsel %vm294_vm5, %v285_v63, 0.0 }
 0x21b   :  { %v297_v5 = vadd.f32 %v296_v1, %v295_v4 }
 0x21c   :  { %v483_v61 = vpop.eup %482 }
 0x21d   :  { %488 = vlog2.f32 %v483_v61 }
 0x21f   :  { %v485_v0 = vpop.eup %484 }
 0x220   :  { %v487_v2 = vpop.eup %486  ;;  %v291_v6 = vmul.f32 0.6931472, %v485_v0 }
 0x221   :  { %v289_v3 = vmul.f32 0.6931472, %v487_v2 }
 0x222   :  { %v300_v11 = vsel %vm294_vm5, %v291_v6, 0.0 }
 0x223   :  { %v298_v7 = vsel %vm294_vm5, %v289_v3, 0.0 }
 0x224   :  { %v299_v8 = vadd.f32 %v298_v7, %v297_v5 }
 0x226   :  { %v301_v12 = vadd.f32 %v300_v11, %v299_v8 }
 0x227   :  { %v489_v9 = vpop.eup %488 }
 0x228   :  { %v293_v10 = vmul.f32 0.6931472, %v489_v9 }
 0x22a   :  { %v302_v13 = vsel %vm294_vm5, %v293_v10, 0.0 }
 0x22b   :  { %v303_v14 = vadd.f32 %v302_v13, %v301_v12 }
 0x22d   :  { %304 = vadd.xlane.f32.xlu1 %v303_v14 }
 0x2ba   :  { %v305_v15 = vpop.xlane.xlu1 %304 }
 0x2bb   :  { %v306_v16 = vrot.slane %v305_v15, 4 }
 0x2bd   :  { %v307_v17 = vadd.f32 %v306_v16, %v305_v15 }
 0x2bf   :  { %v308_v19 = vrot.slane %v307_v17, 2 }
 0x2c1   :  { %v309_v20 = vadd.f32 %v308_v19, %v307_v17 }
 0x2c3   :  { %v310_v21 = vrot.slane %v309_v20, 1 }
 0x2c5   :  { %v311_v22 = vadd.f32 %v310_v21, %v309_v20 }
 0x2c7   :  { %452 = vpush %v311_v22 }
 0x2f8   :  { %s453_s1 = spop %452 }
 0x2f9   :  { %v313_v23 = vstv %s453_s1 }
 0x2fa   :  { %314 = vst [vmem:[%s669_s3] sm:$0xff] %v313_v23 }

</bundles_post_ra>
